<compile_context>
chip_gen: v6e
topology: v6e:2x2x1
jax: 0.10.0
libtpu: 0.0.40
codegen_flags: <defaults>
</compile_context>

<pallas_src>
import jax
import jax.numpy as jnp
from jax.experimental import pallas as pl
from jax.experimental.pallas import tpu as pltpu


def _round_up(n, m):
    return ((n + m - 1) // m) * m


def _fc_block_kernel(x_ref, w1_ref, b1_ref, w2_ref, b2_ref, fwd_ref, out_ref):
    # x_ref : (tb, D_in)      f32   batch tile (DMA'd as f32, cast to bf16 on VPU)
    # w1_ref: (D_in, D_hid)   bf16  resident (constant block index)
    # b1_ref: (1, D_hid)      f32
    # w2_ref: (D_hid, C_pad)  bf16  resident, lane-padded head weights
    # b2_ref: (1, C_pad)      f32
    x = x_ref[...].astype(jnp.bfloat16)  # free: kernel is HBM-bound, VPU has slack

    # fc layer: Linear -> ReLU -> Dropout (eval-mode dropout == identity).
    h = jnp.dot(x, w1_ref[...], preferred_element_type=jnp.float32) + b1_ref[...]
    h = jnp.maximum(h, 0.0)
    # TODO(synk): training-mode Dropout(0.5) (pltpu.prng_seed + prng_random_bits
    # mask with 1/(1-p) rescale) not implemented; eval-mode dropout is identity.
    fwd_ref[...] = h.astype(fwd_ref.dtype)

    # Internal-classifier head: bf16 operands, f32 accumulation (K=64, precision
    # loss negligible; avoids the f32 MXU emulation path).  Lane-dense store.
    o = jnp.dot(h.astype(jnp.bfloat16), w2_ref[...],
                preferred_element_type=jnp.float32) + b2_ref[...]
    out_ref[...] = o.astype(out_ref.dtype)


def fc_block_w_output(x, w1, b1, w2, b2, *, flatten=True, block_b=512,
                      use_pallas=None):
    """Pallas implementation of FcBlockWOutput.forward (add_output=True).

    x : (B, C, H, W) if flatten else (B, D_in)   float32
    w1: (D_in, D_hid)   b1: (D_hid,)
    w2: (D_hid, C_cls)  b2: (C_cls,)
    returns (fwd, 1, out) matching the PyTorch module (eval mode).
    """
    if flatten:
        x2d = jnp.reshape(x, (x.shape[0], -1))  # nn.Flatten() on NCHW
    else:
        x2d = x

    B, D_in = x2d.shape
    D_hid = w1.shape[1]
    C_cls = w2.shape[1]

    # Tiny batches: pallas_call fixed overhead dominates; plain XLA dot fusion
    # is at least as fast.  The demo forces use_pallas=True to exercise the kernel.
    if use_pallas is None:
        use_pallas = B > 16
    if not use_pallas:
        fwd = jnp.maximum(x2d @ w1 + b1, 0.0)
        return fwd, 1, fwd @ w2 + b2

    # ---- batch tile selection (ragged grid, no padding of x / slicing of fwd).
    if B < 8:
        tb = B                                        # full batch dim (legal block)
    else:
        # Guarantee >= 2 grid steps when possible so v7x can shard the "parallel"
        # batch axis across its 2 TensorCores; amortize per-step overhead with
        # large tiles otherwise.
        tb = min(block_b, _round_up(pl.cdiv(B, 2), 8))
    grid = (pl.cdiv(B, tb),)

    # ---- weights: bf16 for the MXU (f32 accumulation in-kernel); biases f32.
    w1_bf = w1.astype(jnp.bfloat16)
    b1_2d = b1.astype(jnp.float32).reshape(1, D_hid)

    # ---- lane-dense head: pad num_classes up to a multiple of 128 so the
    #      `out` store is an unmasked full-lane vst. (w1 is deliberately NOT
    #      padded: that would grow the dominant DMA.)
    C_pad = _round_up(max(C_cls, 128), 128)
    w2_p = jnp.pad(w2.astype(jnp.bfloat16), ((0, 0), (0, C_pad - C_cls)))
    b2_p = jnp.pad(b2.astype(jnp.float32).reshape(1, C_cls),
                   ((0, 0), (0, C_pad - C_cls)))

    flops = 2 * B * D_in * D_hid + 2 * B * D_hid * C_pad
    bytes_accessed = (
        x2d.size * 4 + w1_bf.size * 2 + b1_2d.size * 4
        + w2_p.size * 2 + b2_p.size * 4
        + (B * D_hid + B * C_pad) * 4
    )

    fwd, out_p = pl.pallas_call(
        _fc_block_kernel,
        out_shape=(
            jax.ShapeDtypeStruct((B, D_hid), jnp.float32),
            jax.ShapeDtypeStruct((B, C_pad), jnp.float32),
        ),
        grid_spec=pltpu.PrefetchScalarGridSpec(
            num_scalar_prefetch=0,
            grid=grid,
            in_specs=[
                pl.BlockSpec((tb, D_in), lambda i: (i, 0)),      # x batch tile (f32)
                pl.BlockSpec((D_in, D_hid), lambda i: (0, 0)),   # w1 (resident, bf16)
                pl.BlockSpec((1, D_hid), lambda i: (0, 0)),      # b1
                pl.BlockSpec((D_hid, C_pad), lambda i: (0, 0)),  # w2 (resident, bf16)
                pl.BlockSpec((1, C_pad), lambda i: (0, 0)),      # b2
            ],
            out_specs=[
                pl.BlockSpec((tb, D_hid), lambda i: (i, 0)),     # fwd
                pl.BlockSpec((tb, C_pad), lambda i: (i, 0)),     # out (lane-dense)
            ],
        ),
        compiler_params=pltpu.CompilerParams(
            dimension_semantics=("parallel",),      # shard batch tiles over TCs (v7x)
            vmem_limit_bytes=32 * 1024 * 1024,      # safe on every generation
        ),
        cost_estimate=pl.CostEstimate(
            flops=flops, transcendentals=0, bytes_accessed=bytes_accessed),
    )(x2d.astype(jnp.float32), w1_bf, b1_2d, w2_p, b2_p)

    out = out_p[:, :C_cls]
    return fwd, 1, out


def _init_linear(key, fan_in, fan_out, dtype=jnp.float32):
    """Deterministic init mimicking torch.nn.Linear default (uniform +-1/sqrt(fan_in)).

    Returns weight already transposed to (fan_in, fan_out) for the kernel."""
    kw, kb = jax.random.split(key)
    bound = 1.0 / (fan_in ** 0.5)
    w = jax.random.uniform(kw, (fan_in, fan_out), dtype, minval=-bound, maxval=bound)
    b = jax.random.uniform(kb, (fan_out,), dtype, minval=-bound, maxval=bound)
    return w, b


def _reference(x, w1, b1, w2, b2):
    x2d = x.reshape(x.shape[0], -1)
    fwd = jnp.maximum(x2d @ w1 + b1, 0.0)
    return fwd, fwd @ w2 + b2


if __name__ == "__main__":
    # Module hyperparameters (consistent with the VGG-SDN fc blocks):
    #   fc_params     = (input_size=1024, output_size=64)
    #   output_params = (add_output=True, num_classes=10, output_id=0)
    #   flatten       = True
    C, H, W = 4, 16, 16
    input_size = C * H * W              # 1024
    output_size = 64
    num_classes = 10

    root = jax.random.PRNGKey(0)
    kx, k1, k2, kx2 = jax.random.split(root, 4)

    w1, b1 = _init_linear(k1, input_size, output_size)
    w2, b2 = _init_linear(k2, output_size, num_classes)

    # ---- test 1: tiny batch (B=2), Pallas path forced (single ragged block).
    B = 2
    x = jax.random.normal(kx, (B, C, H, W), jnp.float32)
    fwd, flag, out = fc_block_w_output(x, w1, b1, w2, b2, flatten=True,
                                       use_pallas=True)
    jax.block_until_ready(fwd)
    jax.block_until_ready(out)
    ref_fwd, ref_out = _reference(x, w1, b1, w2, b2)
    assert flag == 1
    assert fwd.shape == (B, output_size) and out.shape == (B, num_classes)
    # Tolerances relaxed: bf16 MXU operands (f32 accumulation), ~1e-3..1e-2 rel.
    assert jnp.allclose(fwd, ref_fwd, atol=3e-2, rtol=3e-2)
    assert jnp.allclose(out, ref_out, atol=3e-2, rtol=3e-2)

    # ---- test 2: larger batch with a ragged, multi-step grid (exercises the
    #      no-pad cdiv grid and the >=2-step "parallel" batch axis).
    B2 = 200
    x2 = jax.random.normal(kx2, (B2, C, H, W), jnp.float32)
    fwd2, flag2, out2 = fc_block_w_output(x2, w1, b1, w2, b2, flatten=True)
    jax.block_until_ready(fwd2)
    jax.block_until_ready(out2)
    ref_fwd2, ref_out2 = _reference(x2, w1, b1, w2, b2)
    assert flag2 == 1
    assert fwd2.shape == (B2, output_size) and out2.shape == (B2, num_classes)
    assert jnp.allclose(fwd2, ref_fwd2, atol=3e-2, rtol=3e-2)
    assert jnp.allclose(out2, ref_out2, atol=3e-2, rtol=3e-2)

    print("KERNEL_OK")
</pallas_src>

<mosaic_0001>
module attributes {stable_mosaic.version = 11 : i64} {
  func.func @_fc_block_kernel(%arg0: i32, %arg1: memref<2x1024xf32, #tpu.memory_space<vmem>>, %arg2: memref<1024x64xbf16, #tpu.memory_space<vmem>>, %arg3: memref<1x64xf32, #tpu.memory_space<vmem>>, %arg4: memref<64x128xbf16, #tpu.memory_space<vmem>>, %arg5: memref<1x128xf32, #tpu.memory_space<vmem>>, %arg6: memref<2x64xf32, #tpu.memory_space<vmem>>, %arg7: memref<2x128xf32, #tpu.memory_space<vmem>>) attributes {dimension_semantics = [#tpu.dimension_semantics<parallel>], iteration_bounds = array<i64: 1>, scalar_prefetch = 0 : i64, scratch_operands = 0 : i64, tpu.core_type = #tpu.core_type<tc>, window_params = [{transform_indices = @transform_0, window_bounds = array<i64: 2, 1024>}, {pipeline_mode = #tpu.pipeline_mode<synchronous>, transform_indices = @transform_1, window_bounds = array<i64: 1024, 64>}, {pipeline_mode = #tpu.pipeline_mode<synchronous>, transform_indices = @transform_2, window_bounds = array<i64: 1, 64>}, {pipeline_mode = #tpu.pipeline_mode<synchronous>, transform_indices = @transform_3, window_bounds = array<i64: 64, 128>}, {pipeline_mode = #tpu.pipeline_mode<synchronous>, transform_indices = @transform_4, window_bounds = array<i64: 1, 128>}, {transform_indices = @transform_5, window_bounds = array<i64: 2, 64>}, {transform_indices = @transform_6, window_bounds = array<i64: 2, 128>}]} {
    %c0 = arith.constant 0 : index
    %c0_0 = arith.constant 0 : index
    %0 = vector.load %arg1[%c0, %c0_0] : memref<2x1024xf32, #tpu.memory_space<vmem>>, vector<2x1024xf32>
    %1 = arith.truncf %0 : vector<2x1024xf32> to vector<2x1024xbf16>
    %c0_1 = arith.constant 0 : index
    %c0_2 = arith.constant 0 : index
    %2 = vector.load %arg2[%c0_1, %c0_2] : memref<1024x64xbf16, #tpu.memory_space<vmem>>, vector<1024x64xbf16>
    %cst = arith.constant dense<0.000000e+00> : vector<2x64xf32>
    %3 = tpu.matmul %1, %2, %cst {dimension_numbers = #tpu.dot_dimension_numbers<[1], [0], [0], [1], [0, 0, 1, 1], [], []>} : vector<2x1024xbf16>, vector<1024x64xbf16>, vector<2x64xf32> -> vector<2x64xf32>
    %c0_3 = arith.constant 0 : index
    %c0_4 = arith.constant 0 : index
    %4 = vector.load %arg3[%c0_3, %c0_4] : memref<1x64xf32, #tpu.memory_space<vmem>>, vector<1x64xf32>
    %5 = vector.broadcast %4 : vector<1x64xf32> to vector<2x64xf32>
    %6 = arith.addf %3, %5 : vector<2x64xf32>
    %cst_5 = arith.constant 0.000000e+00 : f32
    %7 = vector.broadcast %cst_5 : f32 to vector<2x64xf32>
    %8 = arith.maximumf %6, %7 : vector<2x64xf32>
    %c0_6 = arith.constant 0 : index
    %c0_7 = arith.constant 0 : index
    %9 = vector.load %arg6[%c0_6, %c0_7] : memref<2x64xf32, #tpu.memory_space<vmem>>, vector<2x64xf32>
    tpu.vector_store %arg6[%c0_6, %c0_7], %8 {strides = array<i32>} : memref<2x64xf32, #tpu.memory_space<vmem>>, vector<2x64xf32>,
    %10 = arith.truncf %8 : vector<2x64xf32> to vector<2x64xbf16>
    %c0_8 = arith.constant 0 : index
    %c0_9 = arith.constant 0 : index
    %11 = vector.load %arg4[%c0_8, %c0_9] : memref<64x128xbf16, #tpu.memory_space<vmem>>, vector<64x128xbf16>
    %cst_10 = arith.constant dense<0.000000e+00> : vector<2x128xf32>
    %12 = tpu.matmul %10, %11, %cst_10 {dimension_numbers = #tpu.dot_dimension_numbers<[1], [0], [0], [1], [0, 0, 1, 1], [], []>} : vector<2x64xbf16>, vector<64x128xbf16>, vector<2x128xf32> -> vector<2x128xf32>
    %c0_11 = arith.constant 0 : index
    %c0_12 = arith.constant 0 : index
    %13 = vector.load %arg5[%c0_11, %c0_12] : memref<1x128xf32, #tpu.memory_space<vmem>>, vector<1x128xf32>
    %14 = vector.broadcast %13 : vector<1x128xf32> to vector<2x128xf32>
    %15 = arith.addf %12, %14 : vector<2x128xf32>
    %c0_13 = arith.constant 0 : index
    %c0_14 = arith.constant 0 : index
    %16 = vector.load %arg7[%c0_13, %c0_14] : memref<2x128xf32, #tpu.memory_space<vmem>>, vector<2x128xf32>
    tpu.vector_store %arg7[%c0_13, %c0_14], %15 {strides = array<i32>} : memref<2x128xf32, #tpu.memory_space<vmem>>, vector<2x128xf32>,
    return
  }
  func.func @transform_0(%arg0: i32) -> (i32, i32) {
    %c0_i32 = arith.constant 0 : i32
    %c0_i32_0 = arith.constant 0 : i32
    return %arg0, %c0_i32 : i32, i32
  }
  func.func @transform_1(%arg0: i32) -> (i32, i32) {
    %c0_i32 = arith.constant 0 : i32
    %c0_i32_0 = arith.constant 0 : i32
    %c0_i32_1 = arith.constant 0 : i32
    return %c0_i32, %c0_i32_0 : i32, i32
  }
  func.func @transform_2(%arg0: i32) -> (i32, i32) {
    %c0_i32 = arith.constant 0 : i32
    %c0_i32_0 = arith.constant 0 : i32
    %c0_i32_1 = arith.constant 0 : i32
    return %c0_i32, %c0_i32_0 : i32, i32
  }
  func.func @transform_3(%arg0: i32) -> (i32, i32) {
    %c0_i32 = arith.constant 0 : i32
    %c0_i32_0 = arith.constant 0 : i32
    %c0_i32_1 = arith.constant 0 : i32
    return %c0_i32, %c0_i32_0 : i32, i32
  }
  func.func @transform_4(%arg0: i32) -> (i32, i32) {
    %c0_i32 = arith.constant 0 : i32
    %c0_i32_0 = arith.constant 0 : i32
    %c0_i32_1 = arith.constant 0 : i32
    return %c0_i32, %c0_i32_0 : i32, i32
  }
  func.func @transform_5(%arg0: i32) -> (i32, i32) {
    %c0_i32 = arith.constant 0 : i32
    %c0_i32_0 = arith.constant 0 : i32
    return %arg0, %c0_i32 : i32, i32
  }
  func.func @transform_6(%arg0: i32) -> (i32, i32) {
    %c0_i32 = arith.constant 0 : i32
    %c0_i32_0 = arith.constant 0 : i32
    return %arg0, %c0_i32 : i32, i32
  }
}

</mosaic_0001>

<bundles_post_ra>
// kernel: tpu_custom_call.1
= control target key start
LH: loop header
LB: loop body
LE: loop exit
PB: predicated region body
PF: predicated region fallthrough
CT: control target
= control target key end

     0   :  { %12 = vsyncpa [#allocation3], 0  ;;  %v33_v28 = vlaneseq  ;;  %v1169_v36 = vmov 1983009808   ;;  %s1437_s0 = inlined_call_operand.vmem [shape: f32[2,1024], index: 0, kind: input, shape index: {}]   ;;  %s1438_s1 = inlined_call_operand.vmem [shape: bf16[1024,64], index: 1, kind: input, shape index: {}]   ;;  %s1439_s2 = inlined_call_operand.vmem [shape: f32[1,64], index: 2, kind: input, shape index: {}]   ;;  %s1440_s3 = inlined_call_operand.vmem [shape: bf16[64,128], index: 3, kind: input, shape index: {}]   ;;  %s1441_s4 = inlined_call_operand.vmem [shape: f32[1,128], index: 4, kind: input, shape index: {}]   ;;  %s1442_s5 = inlined_call_operand.hbm [shape: f32[2,64], index: 5, kind: output, shape index: {0}]   ;;  %s1443_s6 = inlined_call_operand.hbm [shape: f32[2,128], index: 6, kind: output, shape index: {1}]  }
   0x1   :  { %v1055_v0 = vld [vmem:[%s1438_s1 + $0x78] sm:$0xff]   ;;  %v1059_v4 = vld [vmem:[%s1438_s1 + $0x70] sm:$0xff]   ;;  %v1063_v8 = vld [vmem:[%s1438_s1 + $0x68] sm:$0xff]   ;;  %v31_v37 = vunpack.c.l.s4 %v1169_v36 }
   0x2   :  { %v1056_v1 = vld [vmem:[%s1438_s1 + $0xf8] sm:$0xff]   ;;  %945 = vmatprep.subr.bf16.mxu0 %v1055_v0  ;;  %v1060_v5 = vld [vmem:[%s1438_s1 + $0xf0] sm:$0xff]   ;;  %v1064_v9 = vld [vmem:[%s1438_s1 + $0xe8] sm:$0xff]   ;;  %v34_v33 = vshrl.u32 %v33_v28, 7 }
   0x3   :  { %v1057_v2 = vld [vmem:[%s1438_s1 + $0x38] sm:$0xff]   ;;  %967 = vmatprep.subr.bf16.mxu1 %v1056_v1  ;;  %v1061_v6 = vld [vmem:[%s1438_s1 + $0x30] sm:$0xff]   ;;  %v1065_v10 = vld [vmem:[%s1438_s1 + $0x28] sm:$0xff]   ;;  %v32_v39 = vunpack.c.0.s8 %v31_v37 }
   0x4   :  { %v1058_v3 = vld [vmem:[%s1438_s1 + $0xb8] sm:$0xff]   ;;  %946 = vmatpush3.bf16.msra.mxu0 %v1057_v2  ;;  %v1062_v7 = vld [vmem:[%s1438_s1 + $0xb0] sm:$0xff]   ;;  %v1066_v11 = vld [vmem:[%s1438_s1 + $0xa8] sm:$0xff]  }
   0x5   :  { %968 = vmatpush3.bf16.msra.mxu1 %v1058_v3  ;;  %947 = vmatprep.subr.bf16.mxu0 %v1059_v4  ;;  %v1067_v12 = vld [vmem:[%s1438_s1 + $0x60] sm:$0xff]   ;;  %v1071_v16 = vld [vmem:[%s1438_s1 + $0x58] sm:$0xff]   ;;  %v1075_v20 = vld [vmem:[%s1438_s1 + $0x50] sm:$0xff]   ;;  %v1314_v41 = vsub.s32 %v32_v39, %v34_v33 }
   0x6   :  { %969 = vmatprep.subr.bf16.mxu1 %v1060_v5  ;;  %v1068_v13 = vld [vmem:[%s1438_s1 + $0xe0] sm:$0xff]   ;;  %v1072_v17 = vld [vmem:[%s1438_s1 + $0xd8] sm:$0xff]   ;;  %v1076_v21 = vld [vmem:[%s1438_s1 + $0xd0] sm:$0xff]  }
   0x7   :  { %v1069_v14 = vld [vmem:[%s1438_s1 + $0x20] sm:$0xff]   ;;  %v1073_v18 = vld [vmem:[%s1438_s1 + $0x18] sm:$0xff]   ;;  %v1077_v22 = vld [vmem:[%s1438_s1 + $0x10] sm:$0xff]  }
   0x8   :  { %948 = vmatpush3.bf16.msra.mxu0 %v1061_v6  ;;  %v1070_v15 = vld [vmem:[%s1438_s1 + $0xa0] sm:$0xff]   ;;  %v1074_v19 = vld [vmem:[%s1438_s1 + $0x98] sm:$0xff]   ;;  %v1078_v23 = vld [vmem:[%s1438_s1 + $0x90] sm:$0xff]  }
   0x9   :  { %970 = vmatpush3.bf16.msra.mxu1 %v1062_v7  ;;  %949 = vmatprep.subr.bf16.mxu0 %v1063_v8  ;;  %v1079_v24 = vld [vmem:[%s1438_s1 + $0x48] sm:$0xff]   ;;  %v1083_v29 = vld [vmem:[%s1438_s1 + $0x40] sm:$0xff]   ;;  %v1088_v35 = vld [vmem:[%s1438_s1 + $0x178] sm:$0xff]  }
   0xa   :  { %971 = vmatprep.subr.bf16.mxu1 %v1064_v9  ;;  %v1080_v25 = vld [vmem:[%s1438_s1 + $0xc8] sm:$0xff]   ;;  %v1084_v30 = vld [vmem:[%s1438_s1 + $0xc0] sm:$0xff]   ;;  %v1089_v38 = vld [vmem:[%s1438_s1 + $0x1f8] sm:$0xff]  }
   0xb   :  { %v1081_v26 = vld [vmem:[%s1438_s1 + $0x8] sm:$0xff]   ;;  %v1085_v31 = vld [vmem:[%s1438_s1] sm:$0xff]   ;;  %v1090_v46 = vld [vmem:[%s1438_s1 + $0x138] sm:$0xff]  }
   0xc   :  { %950 = vmatpush3.bf16.msra.mxu0 %v1065_v10  ;;  %v1082_v27 = vld [vmem:[%s1438_s1 + $0x88] sm:$0xff]   ;;  %v1086_v32 = vld [vmem:[%s1438_s1 + $0x80] sm:$0xff]   ;;  %v1091_v49 = vld [vmem:[%s1438_s1 + $0x1b8] sm:$0xff]  }
   0xd   :  { %972 = vmatpush3.bf16.msra.mxu1 %v1066_v11  ;;  %951 = vmatprep.subr.bf16.mxu0 %v1067_v12  ;;  %v25_v34 = vld [vmem:[%s1437_s0] sm:$0xff]  ;;  %v1092_v52 = vld [vmem:[%s1438_s1 + $0x170] sm:$0xff]   ;;  %v1096_v56 = vld [vmem:[%s1438_s1 + $0x168] sm:$0xff]  }
   0xe   :  { %973 = vmatprep.subr.bf16.mxu1 %v1068_v13  ;;  %v29_v40 = vcombine.high %v25_v34, %v25_v34  ;;  %v36_v42 = vrot.slane %v25_v34, %v1314_v41  ;;  %v1093_v53 = vld [vmem:[%s1438_s1 + $0x1f0] sm:$0xff]   ;;  %v1097_v57 = vld [vmem:[%s1438_s1 + $0x1e8] sm:$0xff]   ;;  %v1100_v60 = vld [vmem:[%s1438_s1 + $0x160] sm:$0xff]  }
   0xf   :  { %v1094_v54 = vld [vmem:[%s1438_s1 + $0x130] sm:$0xff]   ;;  %v1098_v58 = vld [vmem:[%s1438_s1 + $0x128] sm:$0xff]   ;;  %v1101_v61 = vld [vmem:[%s1438_s1 + $0x1e0] sm:$0xff]  }
  0x10   :  { %952 = vmatpush3.bf16.msra.mxu0 %v1069_v14  ;;  %v43_v43 = vrot.slane %v29_v40, %v1314_v41  ;;  %v44_v44 = vcombine.high %v36_v42, %v36_v42  ;;  %v71_v47 = vpack.c.bf16 %v36_v42, %v36_v42  ;;  %v1095_v55 = vld [vmem:[%s1438_s1 + $0x1b0] sm:$0xff]   ;;  %v1099_v59 = vld [vmem:[%s1438_s1 + $0x1a8] sm:$0xff]   ;;  %v1102_v62 = vld [vmem:[%s1438_s1 + $0x120] sm:$0xff]  }
  0x11   :  { %974 = vmatpush3.bf16.msra.mxu1 %v1070_v15  ;;  %953 = vmatprep.subr.bf16.mxu0 %v1071_v16  ;;  %v1103_v63 = vld [vmem:[%s1438_s1 + $0x1a0] sm:$0xff]   ;;  %v1104_v0 = vld [vmem:[%s1438_s1 + $0x158] sm:$0xff]   ;;  %v1108_v4 = vld [vmem:[%s1438_s1 + $0x150] sm:$0xff]  }
  0x12   :  { %975 = vmatprep.subr.bf16.mxu1 %v1072_v17  ;;  %v45_v45 = vcombine.high %v43_v43, %v43_v43  ;;  %v73_v48 = vpack.c.bf16 %v43_v43, %v43_v43  ;;  %v72_v50 = vpack.c.bf16 %v44_v44, %v44_v44  ;;  %v1105_v1 = vld [vmem:[%s1438_s1 + $0x1d8] sm:$0xff]   ;;  %v1109_v5 = vld [vmem:[%s1438_s1 + $0x1d0] sm:$0xff]   ;;  %v1112_v8 = vld [vmem:[%s1438_s1 + $0x148] sm:$0xff]  }
  0x13   :  { %v1106_v2 = vld [vmem:[%s1438_s1 + $0x118] sm:$0xff]   ;;  %v1110_v6 = vld [vmem:[%s1438_s1 + $0x110] sm:$0xff]   ;;  %v1113_v9 = vld [vmem:[%s1438_s1 + $0x1c8] sm:$0xff]  }
  0x14   :  { %954 = vmatpush3.bf16.msra.mxu0 %v1073_v18  ;;  %v74_v51 = vpack.c.bf16 %v45_v45, %v45_v45  ;;  %630 = vmatprep.mubr.bf16.mxu0 %v72_v50  ;;  %v1107_v3 = vld [vmem:[%s1438_s1 + $0x198] sm:$0xff]   ;;  %v1111_v7 = vld [vmem:[%s1438_s1 + $0x190] sm:$0xff]   ;;  %v26_v10 = vld [vmem:[%s1437_s0 + $0x8] sm:$0xff] }
  0x15   :  { %976 = vmatpush3.bf16.msra.mxu1 %v1074_v19  ;;  %955 = vmatprep.subr.bf16.mxu0 %v1075_v20  ;;  %v1114_v11 = vld [vmem:[%s1438_s1 + $0x108] sm:$0xff]   ;;  %v53_v12 = vrot.slane %v26_v10, %v1314_v41  ;;  %v46_v13 = vcombine.high %v26_v10, %v26_v10 }
  0x16   :  { %977 = vmatprep.subr.bf16.mxu1 %v1076_v21  ;;  %670 = vmatprep.mubr.bf16.mxu1 %v74_v51  ;;  %v1115_v14 = vld [vmem:[%s1438_s1 + $0x188] sm:$0xff]  }
  0x17   :  { %v61_v15 = vcombine.high %v53_v12, %v53_v12  ;;  %v60_v16 = vrot.slane %v46_v13, %v1314_v41 }
  0x18   :  { %956 = vmatpush3.bf16.msra.mxu0 %v1077_v22 }
  0x19   :  { %978 = vmatpush3.bf16.msra.mxu1 %v1078_v23  ;;  %957 = vmatprep.subr.bf16.mxu0 %v1079_v24 }
  0x1a   :  { %979 = vmatprep.subr.bf16.mxu1 %v1080_v25 }
  0x1c   :  { %958 = vmatpush3.bf16.msra.mxu0 %v1081_v26 }
  0x1d   :  { %980 = vmatpush3.bf16.msra.mxu1 %v1082_v27  ;;  %959 = vmatprep.subr.bf16.mxu0 %v1083_v29 }
  0x1e   :  { %981 = vmatprep.subr.bf16.mxu1 %v1084_v30 }
  0x20   :  { %960 = vmatpush3.bf16.msra.mxu0 %v1085_v31 }
  0x21   :  { %982 = vmatpush3.bf16.msra.mxu1 %v1086_v32  ;;  %989 = vmatprep.subr.bf16.mxu0 %v1088_v35 }
  0x22   :  { %1011 = vmatprep.subr.bf16.mxu1 %v1089_v38 }
  0x23   :  { %631 = vmatmul.mubr.bf16.vlgmr.msra.gmra.mxu0 %v71_v47 }
  0x24   :  { %671 = vmatmul.mubr.bf16.vlgmr.msra.gmra.mxu1 %v73_v48  ;;  %990 = vmatpush3.bf16.msra.mxu0 %v1090_v46 }
  0x25   :  { %1012 = vmatpush3.bf16.msra.mxu1 %v1091_v49  ;;  %991 = vmatprep.subr.bf16.mxu0 %v1092_v52 }
  0x26   :  { %1013 = vmatprep.subr.bf16.mxu1 %v1093_v53 }
  0x28   :  { %992 = vmatpush3.bf16.msra.mxu0 %v1094_v54 }
  0x29   :  { %1014 = vmatpush3.bf16.msra.mxu1 %v1095_v55  ;;  %993 = vmatprep.subr.bf16.mxu0 %v1096_v56 }
  0x2a   :  { %1015 = vmatprep.subr.bf16.mxu1 %v1097_v57 }
  0x2c   :  { %994 = vmatpush3.bf16.msra.mxu0 %v1098_v58 }
  0x2d   :  { %1016 = vmatpush3.bf16.msra.mxu1 %v1099_v59  ;;  %995 = vmatprep.subr.bf16.mxu0 %v1100_v60 }
  0x2e   :  { %1017 = vmatprep.subr.bf16.mxu1 %v1101_v61 }
  0x30   :  { %996 = vmatpush3.bf16.msra.mxu0 %v1102_v62 }
  0x31   :  { %1018 = vmatpush3.bf16.msra.mxu1 %v1103_v63  ;;  %997 = vmatprep.subr.bf16.mxu0 %v1104_v0 }
  0x32   :  { %1019 = vmatprep.subr.bf16.mxu1 %v1105_v1 }
  0x34   :  { %998 = vmatpush3.bf16.msra.mxu0 %v1106_v2 }
  0x35   :  { %1020 = vmatpush3.bf16.msra.mxu1 %v1107_v3  ;;  %999 = vmatprep.subr.bf16.mxu0 %v1108_v4 }
  0x36   :  { %1021 = vmatprep.subr.bf16.mxu1 %v1109_v5 }
  0x38   :  { %1000 = vmatpush3.bf16.msra.mxu0 %v1110_v6 }
  0x39   :  { %1022 = vmatpush3.bf16.msra.mxu1 %v1111_v7 }
  0x3a   :  { %13 = vsyncpa [#allocation5], 0  ;;  %1001 = vmatprep.subr.bf16.mxu0 %v1112_v8  ;;  %1023 = vmatprep.subr.bf16.mxu1 %v1113_v9  ;;  %v1116_v17 = vld [vmem:[%s1438_s1 + $0x140] sm:$0xff]   ;;  %v76_v19 = vpack.c.bf16 %v61_v15, %v61_v15  ;;  %v62_v20 = vcombine.high %v60_v16, %v60_v16  ;;  %v75_v24 = vpack.c.bf16 %v53_v12, %v53_v12  ;;  %v1121_v26 = vld [vmem:[%s1440_s3 + $0x18] sm:$0xff]   ;;  %v1170_v27 = vmov 0.0  }
  0x3b   :  { %v1117_v18 = vld [vmem:[%s1438_s1 + $0x1c0] sm:$0xff]   ;;  %v77_v25 = vpack.c.bf16 %v60_v16, %v60_v16  ;;  %v1122_v28 = vld [vmem:[%s1440_s3 + $0x10] sm:$0xff]   ;;  %v1123_v29 = vld [vmem:[%s1440_s3 + $0x8] sm:$0xff]   ;;  %vm1171_vm0 = vmmov 0   ;;  %vm759_vm1 = vcmask 517120   ;;  %vm801_vm2 = vcmask 523264  }
  0x3c   :  { %1002 = vmatpush3.bf16.msra.mxu0 %v1114_v11  ;;  %v1118_v21 = vld [vmem:[%s1438_s1 + $0x100] sm:$0xff]   ;;  %v78_v23 = vpack.c.bf16 %v62_v20, %v62_v20  ;;  %710 = vmatprep.mubr.bf16.mxu0 %v76_v19 }
  0x3d   :  { %1024 = vmatpush3.bf16.msra.mxu1 %v1115_v14  ;;  %v1119_v22 = vld [vmem:[%s1438_s1 + $0x180] sm:$0xff]   ;;  %1003 = vmatprep.subr.bf16.mxu0 %v1116_v17 }
  0x3e   :  { %1025 = vmatprep.subr.bf16.mxu1 %v1117_v18  ;;  %750 = vmatprep.mubr.bf16.mxu1 %v78_v23  ;;  %v1124_v30 = vld [vmem:[%s1440_s3] sm:$0xff]  }
  0x3f   :  { %v874_v40 = vld [vmem:[%s1439_s2] ss:$0 sm:$0xff]  ;;  %s1172_s2 = smov [#allocation2]  }
  0x40   :  { %1004 = vmatpush3.bf16.msra.mxu0 %v1118_v21  ;;  %s852_s3 = sshll.u32 %s1172_s2, 4  ;;  %s853_s3 = int_to_ptr.vmem [resolvable:$true] %s852_s3 }
  0x41   :  { %1026 = vmatpush3.bf16.msra.mxu1 %v1119_v22  ;;  %1038 = vmatprep.subr.bf16.mxu0 %v1170_v27  ;;  %s1125_s17 = scalar_lea.vmem %s853_s3, 32  ;;  %p1130_p1 = scmp.lt.s32.totalorder %s853_s3, %s853_s3 }
  0x42   :  { %p1126_p0 = scmp.ne.s32.totalorder %s853_s3, %s1125_s17  ;;  %p1131_p2 = scmp.lt.s32.totalorder %s1125_s17, %s1125_s17 }
  0x43   :  { %711 = vmatmul.mubr.bf16.vlgmr.msra.gmra.mxu0 %v75_v24 }
  0x44   :  { %751 = vmatmul.mubr.bf16.vlgmr.msra.gmra.mxu1 %v77_v25  ;;  %1039 = vmatpush3.bf16.msra.mxu0 %v1121_v26  ;;  %p1132_p3 = por %p1131_p2, %p1130_p1 }
  0x45   :  { %1040 = vmatprep.subr.bf16.mxu0 %v1170_v27  ;;  %1046 = vmatprep.mubr.msk.bf16.mxu0 %vm1171_vm0, %v1170_v27 }
  0x46   :  { %p1133_p4 = pnand %p1132_p3, %p1126_p0 }
  0x48   :  { %1041 = vmatpush3.bf16.msra.mxu0 %v1122_v28 }
  0x49   :  { %1042 = vmatprep.subr.bf16.mxu0 %v1170_v27 }
  0x4c   :  { %1043 = vmatpush3.bf16.msra.mxu0 %v1123_v29 }
  0x4d   :  { %1044 = vmatprep.subr.bf16.mxu0 %v1170_v27 }
  0x50   :  { %1045 = vmatpush3.bf16.msra.mxu0 %v1124_v30 }
  0xe3   :  { %v961_v31 = vpop.f32.mrf.mxu0 }
  0xe4   :  { %v983_v32 = vpop.f32.mrf.mxu1 }
  0xe5   :  { %v962_v33 = vpop.f32.mrf.mxu0 }
  0xe6   :  { %v984_v34 = vpop.f32.mrf.mxu1  ;;  %v963_v39 = vadd.f32 %v962_v33, %v961_v31 }
  0xe7   :  { %v964_v35 = vpop.f32.mrf.mxu0  ;;  %v985_v42 = vadd.f32 %v984_v34, %v983_v32 }
  0xe8   :  { %v986_v36 = vpop.f32.mrf.mxu1  ;;  %v633_v41 = vadd.f32 %v963_v39, %v874_v40 }
  0xe9   :  { %v965_v37 = vpop.f32.mrf.mxu0 }
  0xea   :  { %v987_v38 = vpop.f32.mrf.mxu1  ;;  %v673_v47 = vadd.f32 %v985_v42, %v633_v41 }
 0x103   :  { %v1005_v43 = vpop.f32.mrf.mxu0 }
 0x104   :  { %v1027_v44 = vpop.f32.mrf.mxu1 }
 0x105   :  { %v1006_v45 = vpop.f32.mrf.mxu0 }
 0x106   :  { %v1028_v46 = vpop.f32.mrf.mxu1  ;;  %v1007_v48 = vadd.f32 %v1006_v45, %v1005_v43 }
 0x107   :  { %v1008_v49 = vpop.f32.mrf.mxu0  ;;  %v1029_v52 = vadd.f32 %v1028_v46, %v1027_v44 }
 0x108   :  { %v1030_v50 = vpop.f32.mrf.mxu1  ;;  %v713_v51 = vadd.f32 %v1007_v48, %v673_v47 }
 0x109   :  { %v1009_v53 = vpop.f32.mrf.mxu0 }
 0x10a   :  { %v1031_v54 = vpop.f32.mrf.mxu1  ;;  %v753_v55 = vadd.f32 %v1029_v52, %v713_v51 }
 0x10c   :  { %v758_v56 = vmax.f32 %v753_v55, 0.0 }
 0x10e   :  { %v761_v57 = vpack.c.bf16 %v758_v56, %v758_v56  ;;  %760 = vst.msk [vmem:[#allocation2] sm:$0x3] %vm759_vm1, %v758_v56 }
 0x110   :  { %1047 = vmatmul.mubr.msk.bf16.vlgmr.msra.gmra.mxu0 %vm801_vm2, %v761_v57 }
 0x111   :  { %1136 = shalt.err (!%p1133_p4)
}
 0x112   :  { %855 = dma.vmem_to_hbm [thread:$0]  %s853_s3, 32, %s1442_s5, [#allocation3]   ;;  %v939_v58 = vld [vmem:[%s1441_s4] ss:$0 sm:$0xff] }
 0x113   :  { %s1173_s22 = smov [#allocation4]  }
 0x114   :  { %s862_s23 = sshll.u32 %s1173_s22, 4  ;;  %s863_s23 = int_to_ptr.vmem [resolvable:$true] %s862_s23 }
 0x115   :  { %s1145_s24 = scalar_lea.vmem %s863_s23, 32  ;;  %p1150_p6 = scmp.lt.s32.totalorder %s863_s23, %s863_s23 }
 0x116   :  { %p1146_p5 = scmp.ne.s32.totalorder %s863_s23, %s1145_s24  ;;  %p1151_p7 = scmp.lt.s32.totalorder %s1145_s24, %s1145_s24 }
 0x118   :  { %p1152_p8 = por %p1151_p7, %p1150_p6 }
 0x11a   :  { %p1153_p9 = pnand %p1152_p8, %p1146_p5 }
 0x1d0   :  { %v839_v59 = vpop.f32.mrf.mxu0 }
 0x1d1   :  { %v840_v60 = vadd.f32 %v939_v58, %v839_v59 }
 0x1d2   :  { %v1048_v61 = vpop.f32.mrf.mxu0 }
 0x1d3   :  { %845 = vst [vmem:[#allocation4] sm:$0x3] %v840_v60 }
 0x1d4   :  { %v842_v62 = vpop.f32.mrf.mxu0 }
 0x1d5   :  { %1156 = shalt.err (!%p1153_p9)
}
 0x1d6   :  { %865 = dma.vmem_to_hbm [thread:$0]  %s863_s23, 32, %s1443_s6, [#allocation5]   ;;  %v1049_v63 = vpop.f32.mrf.mxu0 }
 0x1d7   :  { %1165 = dma.done.wait [#allocation3], 32  }
 0x1d8   :  { %1166 = vsyncadd [#allocation3], 4294967264 }
 0x1d9   :  { %1167 = dma.done.wait [#allocation5], 32  }
 0x1da   :  { %1168 = vsyncadd [#allocation5], 4294967264 }
 0x1db   :  { %872 = vsyncpa [#allocation3], 1 }
 0x1dc   :  { %873 = vsyncpa [#allocation5], 1 }

</bundles_post_ra>
